<compile_context>
chip_gen: v7x
topology: tpu7x:2x2x1
jax: 0.10.0
libtpu: 0.0.40
codegen_flags: <defaults>
</compile_context>

<pallas_src>
import functools

import jax
import jax.numpy as jnp
from jax.experimental import pallas as pl
from jax.experimental.pallas import tpu as pltpu


def _round_up(x: int, m: int) -> int:
    return (x + m - 1) // m * m


def _triplet_loss_kernel(a_ref, p_ref, n_ref, o_ref, *,
                         margin, true_b, tile_rows, feat_dim, feat_chunk):
    """One batch tile: per-row hinge losses -> one per-tile partial sum.

    a/p/n refs: (tile_rows, feat_dim) blocks (any float dtype; f32 accumulate).
    o ref:      (8, 1) block; partial sum at row 0, rows 1..7 zeroed.
    """
    # Chunk the feature axis so live f32 temporaries stay O(tile_rows * chunk).
    acc = jnp.zeros((tile_rows, 1), jnp.float32)
    for c0 in range(0, feat_dim, feat_chunk):
        c1 = min(c0 + feat_chunk, feat_dim)
        a = a_ref[:, c0:c1].astype(jnp.float32)
        p = p_ref[:, c0:c1].astype(jnp.float32)
        n = n_ref[:, c0:c1].astype(jnp.float32)
        dp = a - p
        dn = a - n
        # Fused single cross-lane reduction: sum(dp^2) - sum(dn^2) == sum(dp^2 - dn^2)
        acc = acc + jnp.sum(dp * dp - dn * dn, axis=1, keepdims=True)

    # clamp(pos - neg + margin, min=0)
    loss = jnp.maximum(acc + jnp.float32(margin), 0.0)           # (tile_rows, 1)

    # Mask rows beyond the true batch: the partial last block's padded rows hold
    # undefined data (possibly NaN); jnp.where forces them to exactly 0.
    row = (pl.program_id(0) * tile_rows
           + jax.lax.broadcasted_iota(jnp.int32, (tile_rows, 1), 0))
    loss = jnp.where(row < true_b, loss, 0.0)

    partial = jnp.sum(loss, axis=0, keepdims=True)               # (1, 1)
    out_row = jax.lax.broadcasted_iota(jnp.int32, (8, 1), 0)
    o_ref[...] = jnp.where(out_row == 0, partial, 0.0)           # (8, 1)


def _vmem_limit_bytes() -> int:
    """Generation-aware scoped-VMEM limit: ~55% of physical per-core VMEM."""
    cap = 64 * 1024 * 1024  # conservative default = v7x per-TensorCore VMEM
    try:
        cap = int(getattr(pltpu.get_tpu_info(), "vmem_capacity_bytes", cap))
    except Exception:
        pass
    return max(16 * 1024 * 1024, int(cap * 0.55))


def _choose_tile_rows(batch, feat_dim, in_itemsize, feat_chunk, vmem_limit):
    """Row-tile size with realistic VMEM accounting.

    Per tile row we hold:
      * 3 inputs x 2 pipeline buffers, lane-padded to a 128 multiple, in the
        input dtype, plus
      * ~6 f32 temporaries of one feature chunk (a/p/n upcasts, dp, dn, diff).
    Target ~8 grid steps (v7x dual-core + DMA/compute overlap) while keeping
    tiles >= 512 rows to amortize the ~0.35 us per-grid-step overhead.
    """
    d_lanes = _round_up(feat_dim, 128)
    chunk_lanes = min(_round_up(feat_chunk, 128), d_lanes)
    bytes_per_row = 3 * 2 * d_lanes * in_itemsize + 6 * chunk_lanes * 4
    cap = max(8, int(vmem_limit * 0.7) // bytes_per_row // 8 * 8)

    b_pad8 = _round_up(batch, 8)
    target = max(512, _round_up(-(-b_pad8 // 8), 8))   # ~8 tiles, >= 512 rows
    return int(max(8, min(cap, target, b_pad8)))


def triplet_loss(anchor, positive, negative, margin=1.0):
    """Pallas TPU implementation of TripletLoss.forward (squared-L2 margin loss).

    anchor/positive/negative: (B, D) arrays (f32 or bf16 — no silent promotion;
    bf16 inputs halve HBM traffic, accumulation is always f32).
    Returns a scalar f32.
    """
    assert anchor.shape == positive.shape == negative.shape
    assert anchor.ndim == 2
    assert anchor.dtype == positive.dtype == negative.dtype
    B, D = anchor.shape

    vmem_limit = _vmem_limit_bytes()
    feat_chunk = D if D <= 2048 else 2048       # 128-multiple chunks when chunking
    tb = _choose_tile_rows(B, D, jnp.dtype(anchor.dtype).itemsize,
                           feat_chunk, vmem_limit)
    num_tiles = pl.cdiv(B, tb)                  # no jnp.pad: partial last block is
                                                # handled by Pallas + in-kernel mask

    kernel = functools.partial(
        _triplet_loss_kernel,
        margin=float(margin), true_b=B, tile_rows=tb,
        feat_dim=D, feat_chunk=feat_chunk,
    )

    in_spec = pl.BlockSpec((tb, D), lambda i: (i, 0))
    out_spec = pl.BlockSpec((8, 1), lambda i: (i, 0))

    partials = pl.pallas_call(
        kernel,
        grid=(num_tiles,),
        in_specs=[in_spec, in_spec, in_spec],
        out_specs=out_spec,
        out_shape=jax.ShapeDtypeStruct((num_tiles * 8, 1), jnp.float32),
        compiler_params=pltpu.CompilerParams(
            dimension_semantics=("parallel",),
            vmem_limit_bytes=vmem_limit,
        ),
    )(anchor, positive, negative)

    # Final mean over the TRUE batch size (masked/padded rows contribute 0).
    return jnp.sum(partials) / jnp.float32(B)


if __name__ == "__main__":
    key = jax.random.PRNGKey(0)
    ka, kp, kn = jax.random.split(key, 3)

    B, D = 8, 32  # small shapes: batch=8, embedding dim=32
    anchor = jax.random.normal(ka, (B, D), dtype=jnp.float32)
    positive = jax.random.normal(kp, (B, D), dtype=jnp.float32)
    negative = jax.random.normal(kn, (B, D), dtype=jnp.float32)

    loss = triplet_loss(anchor, positive, negative, margin=1.0)
    loss = jax.block_until_ready(loss)

    # Pure-JAX reference check (same math as the PyTorch module).
    pos_dist = jnp.sum((anchor - positive) ** 2, axis=1)
    neg_dist = jnp.sum((anchor - negative) ** 2, axis=1)
    ref = jnp.mean(jnp.maximum(pos_dist - neg_dist + 1.0, 0.0))
    assert jnp.allclose(loss, ref, rtol=1e-5, atol=1e-5), (loss, ref)

    print("KERNEL_OK")
</pallas_src>

<mosaic_0001>
module attributes {stable_mosaic.version = 11 : i64} {
  func.func @_triplet_loss_kernel(%arg0: i32, %arg1: memref<8x32xf32, #tpu.memory_space<vmem>>, %arg2: memref<8x32xf32, #tpu.memory_space<vmem>>, %arg3: memref<8x32xf32, #tpu.memory_space<vmem>>, %arg4: memref<8x1xf32, #tpu.memory_space<vmem>>) attributes {dimension_semantics = [#tpu.dimension_semantics<parallel>], iteration_bounds = array<i64: 1>, scalar_prefetch = 0 : i64, scratch_operands = 0 : i64, tpu.core_type = #tpu.core_type<tc>, window_params = [{transform_indices = @transform_0, window_bounds = array<i64: 8, 32>}, {transform_indices = @transform_1, window_bounds = array<i64: 8, 32>}, {transform_indices = @transform_2, window_bounds = array<i64: 8, 32>}, {transform_indices = @transform_3, window_bounds = array<i64: 8, 1>}]} {
    %cst = arith.constant 0.000000e+00 : f32
    %0 = vector.broadcast %cst : f32 to vector<8x1xf32>
    %c0 = arith.constant 0 : index
    %c0_0 = arith.constant 0 : index
    %1 = vector.load %arg1[%c0, %c0_0] : memref<8x32xf32, #tpu.memory_space<vmem>>, vector<8x32xf32>
    %c0_1 = arith.constant 0 : index
    %c0_2 = arith.constant 0 : index
    %2 = vector.load %arg2[%c0_1, %c0_2] : memref<8x32xf32, #tpu.memory_space<vmem>>, vector<8x32xf32>
    %c0_3 = arith.constant 0 : index
    %c0_4 = arith.constant 0 : index
    %3 = vector.load %arg3[%c0_3, %c0_4] : memref<8x32xf32, #tpu.memory_space<vmem>>, vector<8x32xf32>
    %4 = arith.subf %1, %2 : vector<8x32xf32>
    %5 = arith.subf %1, %3 : vector<8x32xf32>
    %6 = arith.mulf %4, %4 : vector<8x32xf32>
    %7 = arith.mulf %5, %5 : vector<8x32xf32>
    %8 = arith.subf %6, %7 : vector<8x32xf32>
    %cst_5 = arith.constant dense<0.000000e+00> : vector<8xf32>
    %9 = vector.multi_reduction <add>, %8, %cst_5 [1] : vector<8x32xf32> to vector<8xf32>
    %10 = vector.shape_cast %9 : vector<8xf32> to vector<8x1xf32>
    %11 = arith.addf %0, %10 : vector<8x1xf32>
    %cst_6 = arith.constant 1.000000e+00 : f32
    %12 = vector.broadcast %cst_6 : f32 to vector<8x1xf32>
    %13 = arith.addf %11, %12 : vector<8x1xf32>
    %cst_7 = arith.constant 0.000000e+00 : f32
    %14 = vector.broadcast %cst_7 : f32 to vector<8x1xf32>
    %15 = arith.maximumf %13, %14 : vector<8x1xf32>
    %c8_i32 = arith.constant 8 : i32
    %16 = arith.muli %arg0, %c8_i32 : i32
    %17 = tpu.iota {dimensions = array<i32: 0>} : vector<8x1xi32>
    %18 = vector.broadcast %16 : i32 to vector<8x1xi32>
    %19 = arith.addi %18, %17 : vector<8x1xi32>
    %c8_i32_8 = arith.constant 8 : i32
    %20 = vector.broadcast %c8_i32_8 : i32 to vector<8x1xi32>
    %21 = arith.cmpi slt, %19, %20 : vector<8x1xi32>
    %cst_9 = arith.constant 0.000000e+00 : f32
    %22 = vector.broadcast %cst_9 : f32 to vector<8x1xf32>
    %23 = arith.select %21, %15, %22 : vector<8x1xi1>, vector<8x1xf32>
    %cst_10 = arith.constant dense<0.000000e+00> : vector<1xf32>
    %24 = vector.multi_reduction <add>, %23, %cst_10 [0] : vector<8x1xf32> to vector<1xf32>
    %25 = vector.shape_cast %24 : vector<1xf32> to vector<1x1xf32>
    %26 = tpu.iota {dimensions = array<i32: 0>} : vector<8x1xi32>
    %c0_i32 = arith.constant 0 : i32
    %27 = vector.broadcast %c0_i32 : i32 to vector<8x1xi32>
    %28 = arith.cmpi eq, %26, %27 : vector<8x1xi32>
    %cst_11 = arith.constant 0.000000e+00 : f32
    %29 = vector.shape_cast %25 : vector<1x1xf32> to vector<1x1xf32>
    %30 = vector.broadcast %29 : vector<1x1xf32> to vector<8x1xf32>
    %31 = vector.broadcast %cst_11 : f32 to vector<8x1xf32>
    %32 = arith.select %28, %30, %31 : vector<8x1xi1>, vector<8x1xf32>
    %c0_12 = arith.constant 0 : index
    %c0_13 = arith.constant 0 : index
    %33 = vector.load %arg4[%c0_12, %c0_13] : memref<8x1xf32, #tpu.memory_space<vmem>>, vector<8x1xf32>
    tpu.vector_store %arg4[%c0_12, %c0_13], %32 {strides = array<i32>} : memref<8x1xf32, #tpu.memory_space<vmem>>, vector<8x1xf32>,
    return
  }
  func.func @transform_0(%arg0: i32) -> (i32, i32) {
    %c0_i32 = arith.constant 0 : i32
    %c0_i32_0 = arith.constant 0 : i32
    return %arg0, %c0_i32 : i32, i32
  }
  func.func @transform_1(%arg0: i32) -> (i32, i32) {
    %c0_i32 = arith.constant 0 : i32
    %c0_i32_0 = arith.constant 0 : i32
    return %arg0, %c0_i32 : i32, i32
  }
  func.func @transform_2(%arg0: i32) -> (i32, i32) {
    %c0_i32 = arith.constant 0 : i32
    %c0_i32_0 = arith.constant 0 : i32
    return %arg0, %c0_i32 : i32, i32
  }
  func.func @transform_3(%arg0: i32) -> (i32, i32) {
    %c0_i32 = arith.constant 0 : i32
    %c0_i32_0 = arith.constant 0 : i32
    return %arg0, %c0_i32 : i32, i32
  }
}

</mosaic_0001>

<bundles_post_ra>
// kernel: tpu_custom_call.1
= control target key start
LH: loop header
LB: loop body
LE: loop exit
PB: predicated region body
PF: predicated region fallthrough
CT: control target
= control target key end

     0   :  { %8 = vsyncpa [#allocation3], 0  ;;  %s222_s0 = inlined_call_operand.hbm [shape: f32[8,32], index: 0, kind: input, shape index: {}]   ;;  %s223_s1 = inlined_call_operand.hbm [shape: f32[8,32], index: 1, kind: input, shape index: {}]   ;;  %s224_s2 = inlined_call_operand.hbm [shape: f32[8,32], index: 2, kind: input, shape index: {}]   ;;  %s225_s3 = inlined_call_operand.vmem [shape: f32[8,1], index: 3, kind: output, shape index: {}]  }
   0x1   :  { %9 = vsyncpa [#allocation5], 0  ;;  %s160_s12 = smov [#allocation4]   ;;  %s161_s14 = smov [#allocation2]  }
   0x2   :  { %s26_s13 = sshll.u32 %s160_s12, 4  ;;  %s16_s15 = sshll.u32 %s161_s14, 4  ;;  %s27_s13 = int_to_ptr.vmem [resolvable:$true] %s26_s13  ;;  %s17_s15 = int_to_ptr.vmem [resolvable:$true] %s16_s15 }
   0x3   :  { %s90_s18 = scalar_lea.hbm %s223_s1, 128 }
   0x4   :  { %p91_p0 = scmp.ne.s32.totalorder %s223_s1, %s90_s18  ;;  %p94_p1 = scmp.lt.u32.totalorder %s90_s18, %s223_s1 }
   0x6   :  { %p96_p2 = pnand %p94_p1, %p91_p0 }
   0x8   :  { %99 = shalt.err (!%p96_p2)
}
   0x9   :  { %s100_s23 = scalar_lea.vmem %s27_s13, 128  ;;  %p105_p4 = scmp.lt.s32.totalorder %s27_s13, %s27_s13 }
   0xa   :  { %p101_p3 = scmp.ne.s32.totalorder %s27_s13, %s100_s23  ;;  %p106_p5 = scmp.lt.s32.totalorder %s100_s23, %s100_s23 }
   0xc   :  { %p107_p6 = por %p106_p5, %p105_p4 }
   0xe   :  { %p108_p7 = pnand %p107_p6, %p101_p3 }
  0x10   :  { %111 = shalt.err (!%p108_p7)
}
  0x11   :  { %29 = dma.hbm_to_vmem [thread:$0]  %s223_s1, 128, %s27_s13, [#allocation5]  }
  0x12   :  { %s112_s28 = scalar_lea.hbm %s222_s0, 128 }
  0x13   :  { %p113_p8 = scmp.ne.s32.totalorder %s222_s0, %s112_s28  ;;  %p116_p9 = scmp.lt.u32.totalorder %s112_s28, %s222_s0 }
  0x15   :  { %p118_p10 = pnand %p116_p9, %p113_p8 }
  0x17   :  { %121 = shalt.err (!%p118_p10)
}
  0x18   :  { %s122_s6 = scalar_lea.vmem %s17_s15, 128  ;;  %p127_p12 = scmp.lt.s32.totalorder %s17_s15, %s17_s15 }
  0x19   :  { %p123_p11 = scmp.ne.s32.totalorder %s17_s15, %s122_s6  ;;  %p128_p13 = scmp.lt.s32.totalorder %s122_s6, %s122_s6 }
  0x1b   :  { %p129_p0 = por %p128_p13, %p127_p12 }
  0x1d   :  { %p130_p1 = pnand %p129_p0, %p123_p11 }
  0x1f   :  { %133 = shalt.err (!%p130_p1)
}
  0x20   :  { %19 = dma.hbm_to_vmem [thread:$0]  %s222_s0, 128, %s17_s15, [#allocation3]  }
  0x21   :  { %s162_s8 = smov [#allocation6]   ;;  %s134_s12 = scalar_lea.hbm %s224_s2, 128 }
  0x22   :  { %s36_s9 = sshll.u32 %s162_s8, 4  ;;  %p135_p2 = scmp.ne.s32.totalorder %s224_s2, %s134_s12  ;;  %s37_s9 = int_to_ptr.vmem [resolvable:$true] %s36_s9 }
  0x23   :  { %p138_p3 = scmp.lt.u32.totalorder %s134_s12, %s224_s2 }
  0x25   :  { %p140_p4 = pnand %p138_p3, %p135_p2 }
  0x27   :  { %143 = shalt.err (!%p140_p4)
}
  0x28   :  { %s144_s18 = scalar_lea.vmem %s37_s9, 128  ;;  %p149_p6 = scmp.lt.s32.totalorder %s37_s9, %s37_s9 }
  0x29   :  { %p145_p5 = scmp.ne.s32.totalorder %s37_s9, %s144_s18  ;;  %p150_p7 = scmp.lt.s32.totalorder %s144_s18, %s144_s18 }
  0x2b   :  { %p151_p8 = por %p150_p7, %p149_p6 }
  0x2d   :  { %p152_p9 = pnand %p151_p8, %p145_p5 }
  0x2f   :  { %155 = shalt.err (!%p152_p9)
}
  0x30   :  { %39 = dma.hbm_to_vmem [thread:$0]  %s224_s2, 128, %s37_s9, [#allocation5]  }
  0x31   :  { %156 = dma.done.wait [#allocation3], 128  }
  0x32   :  { %157 = vsyncadd [#allocation3], 4294967168 }
  0x33   :  { %158 = dma.done.wait [#allocation5], 256  }
  0x34   :  { %159 = vsyncadd [#allocation5], 4294967040  ;;  %v49_v0 = vld [vmem:[#allocation2] sm:$0xff]  ;;  %v50_v1 = vld [vmem:[#allocation4] sm:$0xff]  ;;  %vm57_vm0 = vcmask 261120   ;;  %v65_v13 = vlaneseq  ;;  %vm79_vm2 = vcmask 7168  }
  0x35   :  { %v51_v2 = vld [vmem:[#allocation6] sm:$0xff]  ;;  %v52_v3 = vsub.f32 %v49_v0, %v50_v1 }
  0x36   :  { %v53_v4 = vsub.f32 %v49_v0, %v51_v2  ;;  %v66_v16 = vshrl.u32 %v65_v13, 7 }
  0x37   :  { %v54_v5 = vmul.f32 %v52_v3, %v52_v3 }
  0x38   :  { %v55_v6 = vmul.f32 %v53_v4, %v53_v4  ;;  %vm77_vm1 = vcmp.eq.s32.totalorder %v66_v16, 0 }
  0x3a   :  { %v56_v7 = vsub.f32 %v54_v5, %v55_v6 }
  0x3c   :  { %v58_v8 = vsel %vm57_vm0, %v56_v7, 0.0 }
  0x3d   :  { %59 = vadd.xlane.f32.xlu0 %v58_v8 }
  0xca   :  { %v60_v9 = vpop.xlane.xlu0 %59 }
  0xcb   :  { %v62_v10 = vadd.f32 1.0, %v60_v9 }
  0xcd   :  { %v63_v11 = vmax.f32 %v62_v10, 0.0 }
  0xcf   :  { %v71_v12 = vrot.slane %v63_v11, 4 }
  0xd1   :  { %v72_v14 = vadd.f32 %v71_v12, %v63_v11 }
  0xd3   :  { %v73_v15 = vrot.slane %v72_v14, 2 }
  0xd5   :  { %v74_v17 = vadd.f32 %v73_v15, %v72_v14 }
  0xd7   :  { %v75_v18 = vrot.slane %v74_v17, 1 }
  0xd9   :  { %v76_v19 = vadd.f32 %v75_v18, %v74_v17 }
  0xdb   :  { %v78_v20 = vsel %vm77_vm1, %v76_v19, 0.0 }
  0xdc   :  { %80 = vst.msk [vmem:[%s225_s3] sm:$0xff] %vm79_vm2, %v78_v20 }
  0xdd   :  { %85 = vsyncpa [#allocation3], 1 }
  0xde   :  { %86 = vsyncpa [#allocation5], 1 }

</bundles_post_ra>
